<compile_context>
chip_gen: v7x
topology: tpu7x:2x2x1
jax: 0.10.0
libtpu: 0.0.40
codegen_flags: <defaults>
</compile_context>

<pallas_src>
import jax
import jax.numpy as jnp
from jax.experimental import pallas as pl
from jax.experimental.pallas import tpu as pltpu

_LANE = 1024            # lane-dense width for big batches (multiple of 128)
_LANE_SMALL = 128       # minimal lane width for tiny batches
_MAX_TILE_ROWS = 1024   # 1024 x 1024 f32 = 4 MiB per block
_VMEM_LIMIT = 32 * 1024 * 1024  # explicit scoped-VMEM limit (safe on v5e/v6e/v7x)


def _round_up(x, m):
    return ((x + m - 1) // m) * m


def lognet_kernel(w_ref, b_ref, x_ref, o_ref):
    # w_ref, b_ref: (1,) f32 scalars in SMEM.
    # x_ref, o_ref: (tile_rows, lane) tiles in VMEM (lane-dense, unmasked vst).
    w = w_ref[0]
    b = b_ref[0]
    z = x_ref[...].astype(jnp.float32) * w + b
    # Note (v7x): jax.nn.sigmoid -> lax.logistic keeps the transcendental on the
    # EUP slot; kept exact (no approx reciprocal) to preserve 1e-6 tolerance.
    o_ref[...] = jax.nn.sigmoid(z).astype(o_ref.dtype)


@jax.jit
def lognet_forward(x, weight, bias):
    """Forward of LogNet: sigmoid(x @ W.T + b) with W: (1, 1), b: (1,).

    x: (N, 1) floating array; returns an array of the same shape and dtype.
    """
    orig_shape = x.shape
    if not jnp.issubdtype(x.dtype, jnp.floating):
        x = x.astype(jnp.float32)
    dtype = x.dtype
    n = x.size
    flat = x.reshape(-1)

    w = weight.reshape(1).astype(jnp.float32)
    b = bias.reshape(1).astype(jnp.float32)

    # Lane-dense geometry: view the batch as (rows, lane), lane a multiple of
    # 128, so every store is an unmasked full-vreg vst.
    lane = _LANE if n >= 8 * _LANE else _LANE_SMALL
    rows = pl.cdiv(n, lane)

    # Tile selection: blocks of at most (_MAX_TILE_ROWS, lane) rows, and an
    # even number of grid steps when the grid is short so v7x's two
    # TensorCores get balanced work from the "parallel" axis.
    if rows <= 8:
        tile_rows = rows                   # single block; block shape == array shape
    else:
        steps = max(2, pl.cdiv(rows, _MAX_TILE_ROWS))
        if steps % 2 == 1 and steps < 8:
            steps += 1                     # balance short odd grids across 2 TCs
        tile_rows = _round_up(pl.cdiv(rows, steps), 8)
    grid = (pl.cdiv(rows, tile_rows),)     # partial trailing block handled by Pallas

    total = rows * lane
    if n == total:
        # Fast path: contiguous reshape is free -- no pad, no slice, no alias.
        x2d = flat.reshape(rows, lane)
        aliases = {}
    else:
        # Ragged batch: pad only the sub-lane tail (< lane elements) and compute
        # the sigmoid in place over the freshly padded buffer.
        x2d = jnp.pad(flat, (0, total - n)).reshape(rows, lane)
        aliases = {2: 0}                   # x2d buffer aliased to the output

    out2d = pl.pallas_call(
        lognet_kernel,
        out_shape=jax.ShapeDtypeStruct((rows, lane), dtype),
        grid=grid,
        in_specs=[
            pl.BlockSpec(memory_space=pltpu.SMEM),               # w scalar
            pl.BlockSpec(memory_space=pltpu.SMEM),               # b scalar
            pl.BlockSpec((tile_rows, lane), lambda i: (i, 0)),   # x tile
        ],
        out_specs=pl.BlockSpec((tile_rows, lane), lambda i: (i, 0)),
        input_output_aliases=aliases,
        compiler_params=pltpu.CompilerParams(
            dimension_semantics=("parallel",),
            vmem_limit_bytes=_VMEM_LIMIT,
        ),
        cost_estimate=pl.CostEstimate(
            flops=2 * total,
            transcendentals=total,
            bytes_accessed=2 * total * jnp.dtype(dtype).itemsize,
        ),
    )(w, b, x2d)

    if n == total:
        return out2d.reshape(orig_shape)
    return out2d.reshape(-1)[:n].reshape(orig_shape)


if __name__ == "__main__":
    key = jax.random.PRNGKey(0)
    kx, kw, kb, kx2, kx3 = jax.random.split(key, 5)

    # Parameters matching torch.nn.Linear(1, 1): weight (1, 1), bias (1,).
    weight = jax.random.uniform(kw, (1, 1), jnp.float32, minval=-1.0, maxval=1.0)
    bias = jax.random.uniform(kb, (1,), jnp.float32, minval=-1.0, maxval=1.0)

    def reference(x):
        return jax.nn.sigmoid(x @ weight.T + bias)

    # 1) Small batch consistent with Linear(1, 1): exercises lane=128, sub-lane
    #    pad + in-place aliasing, single full-array block.
    x_small = jax.random.normal(kx, (8, 1), jnp.float32)
    y_small = jax.block_until_ready(lognet_forward(x_small, weight, bias))
    assert y_small.shape == (8, 1)
    assert jnp.allclose(y_small, reference(x_small), atol=1e-6), "small-batch mismatch"

    # 2) Lane-aligned batch: zero-copy fast path (no pad, no slice, no alias),
    #    2-step parallel grid.
    n_fast = 64 * 1024
    x_fast = jax.random.normal(kx2, (n_fast, 1), jnp.float32)
    y_fast = jax.block_until_ready(lognet_forward(x_fast, weight, bias))
    assert y_fast.shape == (n_fast, 1)
    assert jnp.allclose(y_fast, reference(x_fast), atol=1e-6), "fast-path mismatch"

    # 3) Large ragged batch: sub-lane-only pad, in-place aliasing, even 2-step
    #    parallel grid with a partial trailing block.
    n_big = 1_500_003
    x_big = jax.random.normal(kx3, (n_big, 1), jnp.float32)
    y_big = jax.block_until_ready(lognet_forward(x_big, weight, bias))
    assert y_big.shape == (n_big, 1)
    assert jnp.allclose(y_big, reference(x_big), atol=1e-6), "large-batch mismatch"

    print("KERNEL_OK")
</pallas_src>

<mosaic_0001>
module attributes {stable_mosaic.version = 11 : i64} {
  func.func @lognet_kernel(%arg0: i32, %arg1: memref<1xf32, #tpu.memory_space<smem>>, %arg2: memref<1xf32, #tpu.memory_space<smem>>, %arg3: memref<1x128xf32, #tpu.memory_space<vmem>>, %arg4: memref<1x128xf32, #tpu.memory_space<vmem>>) attributes {dimension_semantics = [#tpu.dimension_semantics<parallel>], iteration_bounds = array<i64: 1>, scalar_prefetch = 0 : i64, scratch_operands = 0 : i64, tpu.core_type = #tpu.core_type<tc>, window_params = [{transform_indices = @transform_0, window_bounds = array<i64: 1>}, {transform_indices = @transform_1, window_bounds = array<i64: 1>}, {transform_indices = @transform_2, window_bounds = array<i64: 1, 128>}, {transform_indices = @transform_3, window_bounds = array<i64: 1, 128>}]} {
    %c0 = arith.constant 0 : index
    %0 = memref.load %arg1[%c0] : memref<1xf32, #tpu.memory_space<smem>>
    %c0_0 = arith.constant 0 : index
    %1 = memref.load %arg2[%c0_0] : memref<1xf32, #tpu.memory_space<smem>>
    %c0_1 = arith.constant 0 : index
    %c0_2 = arith.constant 0 : index
    %2 = vector.load %arg3[%c0_1, %c0_2] : memref<1x128xf32, #tpu.memory_space<vmem>>, vector<1x128xf32>
    %3 = vector.broadcast %0 : f32 to vector<1x128xf32>
    %4 = arith.mulf %2, %3 : vector<1x128xf32>
    %5 = vector.broadcast %1 : f32 to vector<1x128xf32>
    %6 = arith.addf %4, %5 : vector<1x128xf32>
    %7 = arith.negf %6 : vector<1x128xf32>
    %8 = math.exp %7 : vector<1x128xf32>
    %cst = arith.constant 1.000000e+00 : f32
    %9 = vector.broadcast %cst : f32 to vector<1x128xf32>
    %10 = arith.addf %9, %8 : vector<1x128xf32>
    %11 = arith.divf %9, %10 : vector<1x128xf32>
    %c0_3 = arith.constant 0 : index
    %c0_4 = arith.constant 0 : index
    %12 = vector.load %arg4[%c0_3, %c0_4] : memref<1x128xf32, #tpu.memory_space<vmem>>, vector<1x128xf32>
    tpu.vector_store %arg4[%c0_3, %c0_4], %11 {strides = array<i32>} : memref<1x128xf32, #tpu.memory_space<vmem>>, vector<1x128xf32>,
    return
  }
  func.func @transform_0(%arg0: i32) -> i32 {
    %c0_i32 = arith.constant 0 : i32
    %c0_i32_0 = arith.constant 0 : i32
    return %c0_i32 : i32
  }
  func.func @transform_1(%arg0: i32) -> i32 {
    %c0_i32 = arith.constant 0 : i32
    %c0_i32_0 = arith.constant 0 : i32
    return %c0_i32 : i32
  }
  func.func @transform_2(%arg0: i32) -> (i32, i32) {
    %c0_i32 = arith.constant 0 : i32
    %c0_i32_0 = arith.constant 0 : i32
    return %arg0, %c0_i32 : i32, i32
  }
  func.func @transform_3(%arg0: i32) -> (i32, i32) {
    %c0_i32 = arith.constant 0 : i32
    %c0_i32_0 = arith.constant 0 : i32
    return %arg0, %c0_i32 : i32, i32
  }
}

</mosaic_0001>

<bundles_post_ra>
// kernel: lognet_forward.1
= control target key start
LH: loop header
LB: loop body
LE: loop exit
PB: predicated region body
PF: predicated region fallthrough
CT: control target
= control target key end

     0   :  { %s71_s0 = inlined_call_operand.<no memory space> [shape: f32[1], index: 0, kind: input, shape index: {}]   ;;  %s72_s1 = inlined_call_operand.<no memory space> [shape: f32[1], index: 1, kind: input, shape index: {}]   ;;  %s73_s2 = inlined_call_operand.vmem [shape: f32[1,128], index: 2, kind: input, shape index: {}, may-alias: {2,3}]   ;;  %s74_s3 = inlined_call_operand.vmem [shape: f32[1,128], index: 3, kind: output, shape index: {}, may-alias: {2,3}]  }
   0x1   :  { %v18_v0 = vld [vmem:[%s73_s2] sm:$0x1]  ;;  %v19_v1 = vstv %s71_s0  ;;  %v21_v2 = vstv %s72_s1 }
   0x2   :  { %v20_v3 = vmul.f32 %v19_v1, %v18_v0 }
   0x4   :  { %v22_v4 = vadd.f32 %v21_v2, %v20_v3 }
   0x6   :  { %v34_v5 = vmul.f32 -1.442695, %v22_v4 }
   0x8   :  { %35 = vpow2.f32 %v34_v5 }
  0x12   :  { %v36_v6 = vpop.eup %35 }
  0x13   :  { %v26_v7 = vadd.f32 1.0, %v36_v6 }
  0x15   :  { %37 = vrcp.f32 %v26_v7 }
  0x1f   :  { %v38_v8 = vpop.eup %37 }
  0x20   :  { %29 = vst [vmem:[%s74_s3] sm:$0x1] %v38_v8 }

</bundles_post_ra>
